<compile_context>
chip_gen: v7x
topology: tpu7x:2x2x1
jax: 0.10.0
libtpu: 0.0.40
codegen_flags: <defaults>
</compile_context>

<pallas_src>
import math

import jax
import jax.numpy as jnp
from jax.experimental import pallas as pl
from jax.experimental.pallas import tpu as pltpu


def erase_add_kernel(x_ref, wf_ref, bf_ref, w_ref, o_ref):
    """One row-tile of the erase/add gate.

    x_ref : [tm, D]    input rows (cast to wf dtype for the MXU)
    wf_ref: [D, 2D]    fused Linear weights, pre-transposed to [in, out]
                       (cols 0:D = erase weight, cols D:2D = add weight)
    bf_ref: [1, 2D]    fused biases [b_e | b_a] (f32)
    w_ref : [tm, 1]    per-row (per-concept) gate scalar (f32)
    o_ref : [tm, D]    output rows
    """
    x = x_ref[...]

    # Canonical [M,K] x [K,N] MXU matmul, f32 accumulate -> [tm, 2D] pre-acts.
    pre = jnp.dot(x.astype(wf_ref.dtype), wf_ref[...],
                  preferred_element_type=jnp.float32) + bf_ref[...]

    D = o_ref.shape[1]
    erase_gate = jax.nn.sigmoid(pre[:, :D])   # EUP slot
    add_feat = jnp.tanh(pre[:, D:])           # EUP slot

    w = w_ref[...]                            # [tm, 1] broadcasts over lanes
    xf = x.astype(jnp.float32)
    # res = x - w*erase*x + w*add  ==  x - w*(erase*x - add)   (one fewer vmul)
    res = xf - w * (erase_gate * xf - add_feat)
    o_ref[...] = res.astype(o_ref.dtype)


def _round_up(a, b):
    return (a + b - 1) // b * b


def _num_tensorcores():
    """Best-effort TensorCores-per-chip query (v5e/v6e = 1, v7x = 2)."""
    try:
        info = pltpu.get_tpu_info()
        for attr in ("num_cores", "core_count", "num_tensorcores",
                     "tensorcore_count", "cores_per_chip"):
            n = getattr(info, attr, None)
            if isinstance(n, int) and n >= 1:
                return n
    except Exception:
        pass
    try:
        if "v7" in jax.devices()[0].device_kind.lower():
            return 2
    except Exception:
        pass
    return 1


def _choose_tm(M, tm_req, num_tc):
    """Row tile: multiple of 8, <= requested. Only split small workloads
    across grid steps when there is more than one TensorCore to feed."""
    m8 = _round_up(max(M, 1), 8)
    tm = min(max(8, tm_req - tm_req % 8), m8)
    if num_tc >= 2:
        grid = -(-M // tm)
        if grid < num_tc and m8 >= 8 * num_tc:
            tm = _round_up(-(-m8 // num_tc), 8)          # one block per TC
        elif grid % num_tc != 0:
            tm2 = _round_up(-(-M // _round_up(grid, num_tc)), 8)
            if tm2 >= 8 and (-(-M // tm2)) % num_tc == 0:
                tm = tm2                                   # balanced grid
    return tm


def _vmem_limit_bytes(tm, D, x_itemsize, out_itemsize, w_itemsize):
    """Size the scoped-VMEM limit from actual usage (double-buffered I/O tiles,
    resident fused weight, f32 epilogue temporaries) plus generous headroom."""
    x_buf = 2 * tm * D * x_itemsize
    o_buf = 2 * tm * D * out_itemsize
    wf_buf = 2 * D * (2 * D) * w_itemsize
    bf_buf = 2 * 8 * (2 * D) * 4
    g_buf = 2 * tm * 128 * 4          # (tm, 1) block padded to 128 lanes
    temps = 4 * tm * (2 * D) * 4      # pre / activations / epilogue (f32)
    est = x_buf + o_buf + wf_buf + bf_buf + g_buf + temps
    return int(max(8 * 1024 * 1024, min(2 * est + (2 << 20), 48 * 1024 * 1024)))


class EraseAddGatePallas:
    """EraseAddGate with fused params built ONCE at init (not per call)."""

    def __init__(self, weight, W_e, b_e, W_a, b_a, *, tm=512,
                 mxu_dtype=jnp.bfloat16):
        # NOTE: mxu_dtype=bf16 (default) casts x and the Linear weights for the
        # MXU matmul (f32 accumulate) — fast but not bit-faithful to torch f32.
        # Pass mxu_dtype=jnp.float32 for exact semantics.
        self.num_c = int(weight.shape[0])
        self.D = int(W_e.shape[0])
        # Torch Linear weights are [out, in]; fuse and pre-transpose once to
        # the MXU-canonical [in, 2*out] layout (cols 0:D erase, D:2D add).
        self.W_f = jnp.concatenate([W_e, W_a], axis=0).T.astype(mxu_dtype)
        self.b_f = jnp.concatenate([b_e, b_a]).reshape(1, 2 * self.D).astype(jnp.float32)
        self.weight = weight.astype(jnp.float32)
        self.tm = tm
        self._num_tc = _num_tensorcores()
        self._w_rows_cache = {}

    def _w_rows(self, B):
        # Per-row concept gate: row index = b*num_c + c -> weight[c].
        # (Relies on x.reshape(B*num_c, D) row order: batch-major, concept-minor.)
        if B not in self._w_rows_cache:
            self._w_rows_cache[B] = jnp.tile(self.weight, (B,)).reshape(
                B * self.num_c, 1)
        return self._w_rows_cache[B]

    def __call__(self, x):
        B, C, D = x.shape
        assert C == self.num_c and D == self.D
        M = B * C
        tm = _choose_tm(M, self.tm, self._num_tc)
        grid = pl.cdiv(M, tm)   # ragged last block handled by Pallas (no jnp.pad)

        x2 = x.reshape(M, D)
        w_rows = self._w_rows(B)

        # TODO(synk): if production feature_dim is not a multiple of 128,
        # zero-pad D to 128 at init so stores stay lane-dense and the
        # pre[:, :D] / pre[:, D:] splits fall on vreg (lane-128) boundaries.
        out2 = pl.pallas_call(
            erase_add_kernel,
            out_shape=jax.ShapeDtypeStruct((M, D), x.dtype),
            grid_spec=pltpu.PrefetchScalarGridSpec(
                num_scalar_prefetch=0,
                grid=(grid,),
                in_specs=[
                    # If profiling shows exposed DMA at large tm, sweep
                    # pipeline_mode=pl.Buffered(3) on this x spec.
                    pl.BlockSpec((tm, D), lambda i: (i, 0)),       # x rows
                    pl.BlockSpec((D, 2 * D), lambda i: (0, 0)),    # fused W (resident)
                    pl.BlockSpec((1, 2 * D), lambda i: (0, 0)),    # fused bias
                    pl.BlockSpec((tm, 1), lambda i: (i, 0)),       # per-row gate
                ],
                out_specs=pl.BlockSpec((tm, D), lambda i: (i, 0)),
            ),
            compiler_params=pltpu.CompilerParams(
                dimension_semantics=("parallel",),
                vmem_limit_bytes=_vmem_limit_bytes(
                    tm, D, x.dtype.itemsize, x.dtype.itemsize,
                    self.W_f.dtype.itemsize),
            ),
        )(x2, self.W_f, self.b_f, w_rows)

        return out2.reshape(B, C, D)


def reference(x, weight, W_e, b_e, W_a, b_a):
    """Pure-JAX reference mirroring the PyTorch forward (f32)."""
    erase_gate = jax.nn.sigmoid(jnp.einsum("bcd,od->bco", x, W_e) + b_e)
    tmp_x = x - weight[None, :, None] * erase_gate * x
    add_feat = jnp.tanh(jnp.einsum("bcd,od->bco", x, W_a) + b_a)
    return tmp_x + weight[None, :, None] * add_feat


if __name__ == "__main__":
    B, num_c, feature_dim = 2, 32, 128   # D = 128 keeps stores lane-dense

    key = jax.random.PRNGKey(0)
    kx, kw, kwe, kbe, kwa, kba = jax.random.split(key, 6)

    # Parameter init matching the module's __init__ conventions.
    stdv = 1.0 / math.sqrt(num_c)
    weight = jax.random.uniform(kw, (num_c,), jnp.float32, -stdv, stdv)

    lin_stdv = 1.0 / math.sqrt(feature_dim)
    W_e = jax.random.uniform(kwe, (feature_dim, feature_dim), jnp.float32, -lin_stdv, lin_stdv)
    b_e = jax.random.uniform(kbe, (feature_dim,), jnp.float32, -lin_stdv, lin_stdv)
    W_a = jax.random.uniform(kwa, (feature_dim, feature_dim), jnp.float32, -lin_stdv, lin_stdv)
    b_a = jax.random.uniform(kba, (feature_dim,), jnp.float32, -lin_stdv, lin_stdv)

    x = jax.random.normal(kx, (B, num_c, feature_dim), jnp.float32)

    ref = reference(x, weight, W_e, b_e, W_a, b_a)

    # 1) Exact-semantics path: f32 MXU operands, f32 I/O — strict tolerance.
    gate_f32 = EraseAddGatePallas(weight, W_e, b_e, W_a, b_a, mxu_dtype=jnp.float32)
    out_f32 = jax.block_until_ready(gate_f32(x))
    assert out_f32.shape == (B, num_c, feature_dim)
    assert jnp.allclose(out_f32, ref, atol=1e-5, rtol=1e-5), "f32 path mismatch vs reference"

    # 2) Fast path: bf16 MXU operands (f32 accumulate), f32 I/O — bf16 tolerance.
    gate_bf16 = EraseAddGatePallas(weight, W_e, b_e, W_a, b_a)   # default bf16 MXU
    out_bf16 = jax.block_until_ready(gate_bf16(x))
    assert out_bf16.shape == (B, num_c, feature_dim)
    assert jnp.allclose(out_bf16, ref, atol=2e-2, rtol=2e-2), "bf16-MXU path mismatch vs reference"

    # 3) Fully bf16 I/O path (halves HBM traffic of this memory-bound op).
    out_io = jax.block_until_ready(gate_bf16(x.astype(jnp.bfloat16)))
    assert out_io.dtype == jnp.bfloat16
    assert jnp.allclose(out_io.astype(jnp.float32), ref, atol=3e-2, rtol=3e-2), \
        "bf16-I/O path mismatch vs reference"

    print("KERNEL_OK")
</pallas_src>

<mosaic_0001>
module attributes {stable_mosaic.version = 11 : i64} {
  func.func @erase_add_kernel(%arg0: i32, %arg1: memref<64x128xf32, #tpu.memory_space<vmem>>, %arg2: memref<128x256xf32, #tpu.memory_space<vmem>>, %arg3: memref<1x256xf32, #tpu.memory_space<vmem>>, %arg4: memref<64x1xf32, #tpu.memory_space<vmem>>, %arg5: memref<64x128xf32, #tpu.memory_space<vmem>>) attributes {dimension_semantics = [#tpu.dimension_semantics<parallel>], iteration_bounds = array<i64: 1>, scalar_prefetch = 0 : i64, scratch_operands = 0 : i64, tpu.core_type = #tpu.core_type<tc>, window_params = [{transform_indices = @transform_0, window_bounds = array<i64: 64, 128>}, {pipeline_mode = #tpu.pipeline_mode<synchronous>, transform_indices = @transform_1, window_bounds = array<i64: 128, 256>}, {pipeline_mode = #tpu.pipeline_mode<synchronous>, transform_indices = @transform_2, window_bounds = array<i64: 1, 256>}, {transform_indices = @transform_3, window_bounds = array<i64: 64, 1>}, {transform_indices = @transform_4, window_bounds = array<i64: 64, 128>}]} {
    %c0 = arith.constant 0 : index
    %c0_0 = arith.constant 0 : index
    %0 = vector.load %arg1[%c0, %c0_0] : memref<64x128xf32, #tpu.memory_space<vmem>>, vector<64x128xf32>
    %c0_1 = arith.constant 0 : index
    %c0_2 = arith.constant 0 : index
    %1 = vector.load %arg2[%c0_1, %c0_2] : memref<128x256xf32, #tpu.memory_space<vmem>>, vector<128x256xf32>
    %cst = arith.constant dense<0.000000e+00> : vector<64x256xf32>
    %2 = tpu.matmul %0, %1, %cst {dimension_numbers = #tpu.dot_dimension_numbers<[1], [0], [0], [1], [0, 0, 1, 1], [], []>} : vector<64x128xf32>, vector<128x256xf32>, vector<64x256xf32> -> vector<64x256xf32>
    %c0_3 = arith.constant 0 : index
    %c0_4 = arith.constant 0 : index
    %3 = vector.load %arg3[%c0_3, %c0_4] : memref<1x256xf32, #tpu.memory_space<vmem>>, vector<1x256xf32>
    %4 = vector.broadcast %3 : vector<1x256xf32> to vector<64x256xf32>
    %5 = arith.addf %2, %4 : vector<64x256xf32>
    %6 = vector.extract_strided_slice %5 {offsets = [0, 0], sizes = [64, 128], strides = [1, 1]} : vector<64x256xf32> to vector<64x128xf32>
    %7 = arith.negf %6 : vector<64x128xf32>
    %8 = math.exp %7 : vector<64x128xf32>
    %cst_5 = arith.constant 1.000000e+00 : f32
    %9 = vector.broadcast %cst_5 : f32 to vector<64x128xf32>
    %10 = arith.addf %9, %8 : vector<64x128xf32>
    %11 = arith.divf %9, %10 : vector<64x128xf32>
    %12 = vector.extract_strided_slice %5 {offsets = [0, 128], sizes = [64, 128], strides = [1, 1]} : vector<64x256xf32> to vector<64x128xf32>
    %13 = math.tanh %12 : vector<64x128xf32>
    %c0_6 = arith.constant 0 : index
    %c0_7 = arith.constant 0 : index
    %14 = vector.load %arg4[%c0_6, %c0_7] : memref<64x1xf32, #tpu.memory_space<vmem>>, vector<64x1xf32>
    %15 = arith.mulf %11, %0 : vector<64x128xf32>
    %16 = arith.subf %15, %13 : vector<64x128xf32>
    %17 = vector.broadcast %14 : vector<64x1xf32> to vector<64x128xf32>
    %18 = arith.mulf %17, %16 : vector<64x128xf32>
    %19 = arith.subf %0, %18 : vector<64x128xf32>
    %c0_8 = arith.constant 0 : index
    %c0_9 = arith.constant 0 : index
    %20 = vector.load %arg5[%c0_8, %c0_9] : memref<64x128xf32, #tpu.memory_space<vmem>>, vector<64x128xf32>
    tpu.vector_store %arg5[%c0_8, %c0_9], %19 {strides = array<i32>} : memref<64x128xf32, #tpu.memory_space<vmem>>, vector<64x128xf32>,
    return
  }
  func.func @transform_0(%arg0: i32) -> (i32, i32) {
    %c0_i32 = arith.constant 0 : i32
    %c0_i32_0 = arith.constant 0 : i32
    return %arg0, %c0_i32 : i32, i32
  }
  func.func @transform_1(%arg0: i32) -> (i32, i32) {
    %c0_i32 = arith.constant 0 : i32
    %c0_i32_0 = arith.constant 0 : i32
    %c0_i32_1 = arith.constant 0 : i32
    return %c0_i32, %c0_i32_0 : i32, i32
  }
  func.func @transform_2(%arg0: i32) -> (i32, i32) {
    %c0_i32 = arith.constant 0 : i32
    %c0_i32_0 = arith.constant 0 : i32
    %c0_i32_1 = arith.constant 0 : i32
    return %c0_i32, %c0_i32_0 : i32, i32
  }
  func.func @transform_3(%arg0: i32) -> (i32, i32) {
    %c0_i32 = arith.constant 0 : i32
    %c0_i32_0 = arith.constant 0 : i32
    return %arg0, %c0_i32 : i32, i32
  }
  func.func @transform_4(%arg0: i32) -> (i32, i32) {
    %c0_i32 = arith.constant 0 : i32
    %c0_i32_0 = arith.constant 0 : i32
    return %arg0, %c0_i32 : i32, i32
  }
}

</mosaic_0001>

<bundles_post_ra>
// kernel: tpu_custom_call.1
= control target key start
LH: loop header
LB: loop body
LE: loop exit
PB: predicated region body
PF: predicated region fallthrough
CT: control target
= control target key end

     0   :  { %9 = vsyncpa [#allocation3], 0  ;;  %s686_s0 = inlined_call_operand.vmem [shape: f32[64,128], index: 0, kind: input, shape index: {}]   ;;  %s687_s1 = inlined_call_operand.hbm [shape: f32[128,256], index: 1, kind: input, shape index: {}]   ;;  %s688_s2 = inlined_call_operand.vmem [shape: f32[1,256], index: 2, kind: input, shape index: {}]   ;;  %s689_s3 = inlined_call_operand.vmem [shape: f32[64,1], index: 3, kind: input, shape index: {}]   ;;  %s690_s4 = inlined_call_operand.hbm [shape: f32[64,128], index: 4, kind: output, shape index: {}]  }
   0x1   :  { %10 = vsyncpa [#allocation4], 0  ;;  %s520_s15 = smov [#allocation2]   ;;  %s472_s19 = scalar_lea.hbm %s687_s1, 4096 }
   0x2   :  { %s18_s16 = sshll.u32 %s520_s15, 4  ;;  %p473_p0 = scmp.ne.s32.totalorder %s687_s1, %s472_s19  ;;  %s19_s16 = int_to_ptr.vmem [resolvable:$true] %s18_s16 }
   0x3   :  { %p476_p1 = scmp.lt.u32.totalorder %s472_s19, %s687_s1 }
   0x5   :  { %p478_p2 = pnand %p476_p1, %p473_p0 }
   0x7   :  { %481 = shalt.err (!%p478_p2)
}
   0x8   :  { %s482_s24 = scalar_lea.vmem %s19_s16, 4096  ;;  %p487_p4 = scmp.lt.s32.totalorder %s19_s16, %s19_s16 }
   0x9   :  { %p483_p3 = scmp.ne.s32.totalorder %s19_s16, %s482_s24  ;;  %p488_p5 = scmp.lt.s32.totalorder %s482_s24, %s482_s24 }
   0xb   :  { %p489_p6 = por %p488_p5, %p487_p4 }
   0xd   :  { %p490_p7 = pnand %p489_p6, %p483_p3 }
   0xf   :  { %493 = shalt.err (!%p490_p7)
}
  0x10   :  { %s521_s25 = smov 256   ;;  %s522_s26 = smov 16  }
  0x11   :  { %24 = dma.hbm_to_vmem [thread:$0]  %s687_s1, 4096, %s19_s16, [#allocation3], %s521_s25, %s521_s25, %s522_s26  }
  0x12   :  { %516 = dma.done.wait [#allocation3], 4096  }
  0x13   :  { %517 = vsyncadd [#allocation3], 4294963200  ;;  %v523_v0 = vmov 0.0   ;;  %v524_v1 = vmov 0   ;;  %v41_v2 = vld [vmem:[#allocation2 + $0x8] sm:$0xff]  ;;  %v43_v3 = vld [vmem:[#allocation2 + $0x18] sm:$0xff] }
  0x14   :  { %148 = vmatprep.mubr.f32.mxu0 %v523_v0  ;;  %172 = vmatprep.mubr.f32.mxu1 %v523_v0  ;;  %v40_v4 = vld [vmem:[#allocation2] sm:$0xff]  ;;  %v366_v5 = vpack.c.bf16 %v43_v3, %v41_v2  ;;  %v42_v6 = vld [vmem:[#allocation2 + $0x10] sm:$0xff]  ;;  %v45_v7 = vld [vmem:[#allocation2 + $0x28] sm:$0xff]  ;;  %v74_v3 = vlaneseq }
  0x15   :  { %423 = vset.pattern.permute.xlu1 %v524_v1  ;;  %422 = vset.pattern.permute.xlu0 %v524_v1  ;;  %v47_v8 = vld [vmem:[#allocation2 + $0x38] sm:$0xff]  ;;  %v368_v9 = vpack.c.bf16 %v42_v6, %v40_v4  ;;  %v44_v11 = vld [vmem:[#allocation2 + $0x20] sm:$0xff]  ;;  %v46_v12 = vld [vmem:[#allocation2 + $0x30] sm:$0xff] }
  0x16   :  { %v370_v10 = vpack.c.bf16 %v47_v8, %v45_v7  ;;  %v49_v13 = vld [vmem:[#allocation2 + $0x48] sm:$0xff]  ;;  %367 = vmatprep.subr.bf16.mxu0 %v366_v5  ;;  %398 = vmatprep.subr.bf16.mxu1 %v366_v5  ;;  %v51_v14 = vld [vmem:[#allocation2 + $0x58] sm:$0xff]  ;;  %v372_v15 = vpack.c.bf16 %v46_v12, %v44_v11  ;;  %v48_v17 = vld [vmem:[#allocation2 + $0x40] sm:$0xff]  ;;  %v75_v4 = vshrl.u32 %v74_v3, 7 }
  0x17   :  { %369 = vmatpush1.bf16.msra.mxu0 %v368_v9  ;;  %406 = vmatpush1.bf16.msra.mxu1 %v368_v9  ;;  %v374_v16 = vpack.c.bf16 %v51_v14, %v49_v13  ;;  %v50_v18 = vld [vmem:[#allocation2 + $0x50] sm:$0xff]  ;;  %v53_v19 = vld [vmem:[#allocation2 + $0x68] sm:$0xff]  ;;  %v55_v20 = vld [vmem:[#allocation2 + $0x78] sm:$0xff] }
  0x18   :  { %371 = vmatprep.subr.bf16.mxu0 %v370_v10  ;;  %399 = vmatprep.subr.bf16.mxu1 %v370_v10  ;;  %v376_v21 = vpack.c.bf16 %v50_v18, %v48_v17  ;;  %v378_v22 = vpack.c.bf16 %v55_v20, %v53_v19  ;;  %v52_v23 = vld [vmem:[#allocation2 + $0x60] sm:$0xff]  ;;  %v54_v24 = vld [vmem:[#allocation2 + $0x70] sm:$0xff]  ;;  %v57_v25 = vld [vmem:[#allocation2 + $0x88] sm:$0xff]  ;;  %v76_v5 = vsub.s32 0, %v75_v4 }
  0x19   :  { %v59_v26 = vld [vmem:[#allocation2 + $0x98] sm:$0xff]  ;;  %v380_v27 = vpack.c.bf16 %v54_v24, %v52_v23  ;;  %v56_v28 = vld [vmem:[#allocation2 + $0x80] sm:$0xff]  ;;  %v58_v30 = vld [vmem:[#allocation2 + $0x90] sm:$0xff] }
  0x1a   :  { %v382_v29 = vpack.c.bf16 %v59_v26, %v57_v25  ;;  %v255_v31 = vld [vmem:[%s689_s3 + $0x10] sm:$0xff]  ;;  %v253_v32 = vld [vmem:[%s689_s3] sm:$0xff]  ;;  %v61_v33 = vld [vmem:[#allocation2 + $0xa8] sm:$0xff]  ;;  %v384_v37 = vpack.c.bf16 %v58_v30, %v56_v28 }
  0x1b   :  { %373 = vmatpush1.bf16.msra.mxu0 %v372_v15  ;;  %407 = vmatpush1.bf16.msra.mxu1 %v372_v15  ;;  %v63_v34 = vld [vmem:[#allocation2 + $0xb8] sm:$0xff]  ;;  %v254_v36 = vld [vmem:[%s689_s3 + $0x8] sm:$0xff]  ;;  %v60_v39 = vld [vmem:[#allocation2 + $0xa0] sm:$0xff]  ;;  %v80_v15 = vsub.s32 1, %v75_v4 }
  0x1c   :  { %375 = vmatprep.subr.bf16.mxu0 %v374_v16  ;;  %400 = vmatprep.subr.bf16.mxu1 %v374_v16  ;;  %v256_v35 = vld [vmem:[%s689_s3 + $0x18] sm:$0xff]  ;;  %v386_v38 = vpack.c.bf16 %v63_v34, %v61_v33  ;;  %v62_v40 = vld [vmem:[#allocation2 + $0xb0] sm:$0xff]  ;;  %v65_v41 = vld [vmem:[#allocation2 + $0xc8] sm:$0xff] }
  0x1d   :  { %289 = vperm.xlu1 %423, %v255_v31   ;;  %279 = vperm.xlu0 %422, %v253_v32   ;;  %v67_v42 = vld [vmem:[#allocation2 + $0xd8] sm:$0xff]  ;;  %v258_v43 = vld [vmem:[%s689_s3 + $0x28] sm:$0xff]  ;;  %v257_v44 = vld [vmem:[%s689_s3 + $0x20] sm:$0xff]  ;;  %v388_v45 = vpack.c.bf16 %v62_v40, %v60_v39 }
  0x1e   :  { %v390_v46 = vpack.c.bf16 %v67_v42, %v65_v41  ;;  %v64_v47 = vld [vmem:[#allocation2 + $0xc0] sm:$0xff]  ;;  %v66_v48 = vld [vmem:[#allocation2 + $0xd0] sm:$0xff]  ;;  %v69_v49 = vld [vmem:[#allocation2 + $0xe8] sm:$0xff] }
  0x1f   :  { %377 = vmatpush1.bf16.msra.mxu0 %v376_v21  ;;  %408 = vmatpush1.bf16.msra.mxu1 %v376_v21  ;;  %v71_v50 = vld [vmem:[#allocation2 + $0xf8] sm:$0xff]  ;;  %v259_v52 = vld [vmem:[%s689_s3 + $0x30] sm:$0xff]  ;;  %v392_v53 = vpack.c.bf16 %v66_v48, %v64_v47  ;;  %v68_v55 = vld [vmem:[#allocation2 + $0xe0] sm:$0xff] }
  0x20   :  { %379 = vmatprep.subr.bf16.mxu0 %v378_v22  ;;  %401 = vmatprep.subr.bf16.mxu1 %v378_v22  ;;  %v260_v51 = vld [vmem:[%s689_s3 + $0x38] sm:$0xff]  ;;  %v394_v54 = vpack.c.bf16 %v71_v50, %v69_v49  ;;  %v70_v56 = vld [vmem:[#allocation2 + $0xf0] sm:$0xff]  ;;  %v594_v58 = vld [vmem:[%s686_s0] sm:$0xff] }
  0x21   :  { %294 = vperm.xlu1 %423, %v256_v35   ;;  %284 = vperm.xlu0 %422, %v254_v36   ;;  %v396_v57 = vpack.c.bf16 %v70_v56, %v68_v55  ;;  %v599_v59 = vld [vmem:[%s686_s0 + $0x20] sm:$0xff]  ;;  %v608_v60 = vld [vmem:[%s686_s0 + $0x8] sm:$0xff]  ;;  %v622_v62 = vld [vmem:[%s686_s0 + $0x10] sm:$0xff] }
  0x22   :  { %v613_v61 = vld [vmem:[%s686_s0 + $0x28] sm:$0xff]  ;;  %v627_v63 = vld [vmem:[%s686_s0 + $0x30] sm:$0xff]  ;;  %v636_v1 = vld [vmem:[%s686_s0 + $0x18] sm:$0xff] }
  0x23   :  { %381 = vmatpush1.bf16.msra.mxu0 %v380_v27  ;;  %409 = vmatpush1.bf16.msra.mxu1 %v380_v27  ;;  %v641_v2 = vld [vmem:[%s686_s0 + $0x38] sm:$0xff]  ;;  %s525_s0 = smov [#allocation5]  }
  0x24   :  { %383 = vmatprep.subr.bf16.mxu0 %v382_v29  ;;  %402 = vmatprep.subr.bf16.mxu1 %v382_v29 }
  0x25   :  { %304 = vperm.xlu1 %423, %v258_v43   ;;  %299 = vperm.xlu0 %422, %v257_v44  }
  0x27   :  { %385 = vmatpush1.bf16.msra.mxu0 %v384_v37  ;;  %410 = vmatpush1.bf16.msra.mxu1 %v384_v37 }
  0x28   :  { %387 = vmatprep.subr.bf16.mxu0 %v386_v38  ;;  %403 = vmatprep.subr.bf16.mxu1 %v386_v38 }
  0x29   :  { %314 = vperm.xlu1 %423, %v260_v51   ;;  %309 = vperm.xlu0 %422, %v259_v52  }
  0x2b   :  { %389 = vmatpush1.bf16.msra.mxu0 %v388_v45  ;;  %411 = vmatpush1.bf16.msra.mxu1 %v388_v45 }
  0x2c   :  { %391 = vmatprep.subr.bf16.mxu0 %v390_v46  ;;  %404 = vmatprep.subr.bf16.mxu1 %v390_v46 }
  0x2f   :  { %393 = vmatpush1.bf16.msra.mxu0 %v392_v53  ;;  %412 = vmatpush1.bf16.msra.mxu1 %v392_v53 }
  0x30   :  { %395 = vmatprep.subr.bf16.mxu0 %v394_v54  ;;  %405 = vmatprep.subr.bf16.mxu1 %v394_v54 }
  0x33   :  { %397 = vmatpush1.bf16.msra.mxu0 %v396_v57  ;;  %413 = vmatpush1.bf16.msra.mxu1 %v396_v57 }
  0x36   :  { %149 = vmatmul.mubr.f32.vlgmr.msra.gmra.mrb[0].mxu0 %v594_v58  ;;  %173 = vmatmul.mubr.f32.vlgmr.msra.gmra.mrb[0].mxu1 %v599_v59 }
  0x37   :  { %154 = vmatprep.mubr.f32.mxu0 %v523_v0  ;;  %178 = vmatprep.mubr.f32.mxu1 %v523_v0 }
  0x3a   :  { %155 = vmatmul.mubr.f32.gmra.mrb[2].mxu0 %v608_v60  ;;  %179 = vmatmul.mubr.f32.gmra.mrb[2].mxu1 %v613_v61 }
  0x3b   :  { %160 = vmatprep.mubr.f32.mxu0 %v523_v0  ;;  %184 = vmatprep.mubr.f32.mxu1 %v523_v0 }
  0x3e   :  { %161 = vmatmul.mubr.f32.gmra.mrb[4].mxu0 %v622_v62  ;;  %185 = vmatmul.mubr.f32.gmra.mrb[4].mxu1 %v627_v63 }
  0x3f   :  { %166 = vmatprep.mubr.f32.mxu0 %v523_v0  ;;  %190 = vmatprep.mubr.f32.mxu1 %v523_v0  ;;  %v72_v0 = vld [vmem:[%s688_s2] sm:$0x3]  ;;  %s346_s2 = sshll.u32 %s525_s0, 4  ;;  %s347_s2 = int_to_ptr.vmem [resolvable:$true] %s346_s2 }
  0x40   :  { %v77_v6 = vrot.slane %v72_v0, %v76_v5  ;;  %v648_v24 = vrot.slane %v72_v0, %v80_v15  ;;  %s494_s8 = scalar_lea.vmem %s347_s2, 1024  ;;  %p499_p9 = scmp.lt.s32.totalorder %s347_s2, %s347_s2 }
  0x41   :  { %p495_p8 = scmp.ne.s32.totalorder %s347_s2, %s494_s8  ;;  %p500_p10 = scmp.lt.s32.totalorder %s494_s8, %s494_s8 }
  0x42   :  { %167 = vmatmul.mubr.f32.gmra.mrb[6].mxu0 %v636_v1  ;;  %191 = vmatmul.mubr.f32.gmra.mrb[6].mxu1 %v641_v2 }
  0x43   :  { %p501_p11 = por %p500_p10, %p499_p9 }
  0x45   :  { %p502_p12 = pnand %p501_p11, %p495_p8 }
  0x9c   :  { %v280_v53 = vpop.permute.xlu0 %279  ;;  %v290_v5 = vpop.permute.xlu1 %289 }
 0x109   :  { %v150_v7 = vpop.f32.mrb[0].mxu0  ;;  %v174_v8 = vpop.f32.mrb[0].mxu1 }
 0x10a   :  { %v151_v9 = vadd.f32 %v150_v7, %v77_v6  ;;  %v175_v10 = vadd.f32 %v174_v8, %v77_v6  ;;  %v152_v11 = vpop.f32.mrb[1].mxu0  ;;  %v176_v12 = vpop.f32.mrb[1].mxu1 }
 0x10b   :  { %v153_v33 = vadd.f32 %v152_v11, %v648_v24  ;;  %v177_v46 = vadd.f32 %v176_v12, %v648_v24  ;;  %v285_v7 = vpop.permute.xlu0 %284 }
 0x10c   :  { %v358_v13 = vmul.f32 -1.442695, %v151_v9  ;;  %v362_v14 = vmul.f32 -1.442695, %v175_v10 }
 0x10d   :  { %v156_v16 = vpop.f32.mrb[2].mxu0  ;;  %v180_v17 = vpop.f32.mrb[2].mxu1 }
 0x10e   :  { %424 = vpow2.f32 %v358_v13  ;;  %v157_v18 = vadd.f32 %v156_v16, %v77_v6  ;;  %v181_v19 = vadd.f32 %v180_v17, %v77_v6  ;;  %v158_v20 = vpop.f32.mrb[3].mxu0  ;;  %v182_v21 = vpop.f32.mrb[3].mxu1 }
 0x10f   :  { %426 = vpow2.f32 %v362_v14  ;;  %v159_v50 = vadd.f32 %v158_v20, %v648_v24  ;;  %v183_v52 = vadd.f32 %v182_v21, %v648_v24 }
 0x110   :  { %v359_v22 = vmul.f32 -1.442695, %v157_v18  ;;  %v363_v23 = vmul.f32 -1.442695, %v181_v19  ;;  %v295_v19 = vpop.permute.xlu1 %294 }
 0x111   :  { %v162_v25 = vpop.f32.mrb[4].mxu0  ;;  %v186_v26 = vpop.f32.mrb[4].mxu1 }
 0x112   :  { %428 = vpow2.f32 %v359_v22  ;;  %v163_v27 = vadd.f32 %v162_v25, %v77_v6  ;;  %v187_v28 = vadd.f32 %v186_v26, %v77_v6  ;;  %v164_v29 = vpop.f32.mrb[5].mxu0  ;;  %v188_v30 = vpop.f32.mrb[5].mxu1 }
 0x113   :  { %430 = vpow2.f32 %v363_v23  ;;  %v165_v57 = vadd.f32 %v164_v29, %v648_v24  ;;  %v189_v4 = vadd.f32 %v188_v30, %v648_v24  ;;  %v300_v26 = vpop.permute.xlu0 %299 }
 0x114   :  { %v360_v31 = vmul.f32 -1.442695, %v163_v27  ;;  %v364_v32 = vmul.f32 -1.442695, %v187_v28 }
 0x115   :  { %v168_v34 = vpop.f32.mrb[6].mxu0  ;;  %v192_v35 = vpop.f32.mrb[6].mxu1 }
 0x116   :  { %432 = vpow2.f32 %v360_v31  ;;  %v169_v36 = vadd.f32 %v168_v34, %v77_v6  ;;  %v193_v37 = vadd.f32 %v192_v35, %v77_v6  ;;  %v170_v38 = vpop.f32.mrb[7].mxu0  ;;  %v194_v39 = vpop.f32.mrb[7].mxu1 }
 0x117   :  { %434 = vpow2.f32 %v364_v32  ;;  %v171_v10 = vadd.f32 %v170_v38, %v648_v24  ;;  %v195_v17 = vadd.f32 %v194_v39, %v648_v24  ;;  %v305_v38 = vpop.permute.xlu1 %304 }
 0x118   :  { %v425_v40 = vpop.eup %424  ;;  %v361_v41 = vmul.f32 -1.442695, %v169_v36  ;;  %436 = vtanh.f32 %v153_v33  ;;  %v365_v44 = vmul.f32 -1.442695, %v193_v37 }
 0x119   :  { %v427_v42 = vpop.eup %426  ;;  %v221_v43 = vadd.f32 1.0, %v425_v40 }
 0x11a   :  { %v225_v45 = vadd.f32 1.0, %v427_v42  ;;  %438 = vpow2.f32 %v361_v41 }
 0x11b   :  { %440 = vrcp.f32 %v221_v43 }
 0x11c   :  { %v429_v47 = vpop.eup %428  ;;  %442 = vrcp.f32 %v225_v45 }
 0x11d   :  { %v431_v48 = vpop.eup %430  ;;  %v222_v49 = vadd.f32 1.0, %v429_v47  ;;  %444 = vpow2.f32 %v365_v44 }
 0x11e   :  { %446 = vtanh.f32 %v177_v46  ;;  %v226_v51 = vadd.f32 1.0, %v431_v48  ;;  %v310_v48 = vpop.permute.xlu0 %309 }
 0x11f   :  { %448 = vrcp.f32 %v222_v49 }
 0x120   :  { %v433_v54 = vpop.eup %432  ;;  %450 = vrcp.f32 %v226_v51 }
 0x121   :  { %v435_v55 = vpop.eup %434  ;;  %452 = vtanh.f32 %v159_v50  ;;  %v223_v56 = vadd.f32 1.0, %v433_v54 }
 0x122   :  { %454 = vtanh.f32 %v183_v52  ;;  %v227_v3 = vadd.f32 1.0, %v435_v55  ;;  %v437_v0 = vpop.eup %436 }
 0x123   :  { %456 = vrcp.f32 %v223_v56 }
 0x124   :  { %v439_v6 = vpop.eup %438  ;;  %458 = vrcp.f32 %v227_v3  ;;  %v315_v3 = vpop.permute.xlu1 %314 }
 0x125   :  { %v441_v8 = vpop.eup %440  ;;  %460 = vtanh.f32 %v165_v57  ;;  %v224_v9 = vadd.f32 1.0, %v439_v6 }
 0x126   :  { %v443_v11 = vpop.eup %442  ;;  %462 = vtanh.f32 %v189_v4  ;;  %v261_v12 = vmul.f32 %v441_v8, %v594_v58 }
 0x127   :  { %v445_v13 = vpop.eup %444  ;;  %464 = vrcp.f32 %v224_v9  ;;  %v265_v14 = vmul.f32 %v443_v11, %v599_v59 }
 0x128   :  { %v447_v15 = vpop.eup %446  ;;  %v228_v16 = vadd.f32 1.0, %v445_v13  ;;  %v269_v18 = vsub.f32 %v261_v12, %v437_v0  ;;  %466 = vtanh.f32 %v171_v10 }
 0x129   :  { %v449_v20 = vpop.eup %448  ;;  %v273_v21 = vsub.f32 %v265_v14, %v447_v15 }
 0x12a   :  { %v451_v22 = vpop.eup %450  ;;  %468 = vrcp.f32 %v228_v16  ;;  %v317_v23 = vmul.f32 %v280_v53, %v269_v18  ;;  %v262_v25 = vmul.f32 %v449_v20, %v608_v60 }
 0x12b   :  { %v453_v27 = vpop.eup %452  ;;  %v266_v28 = vmul.f32 %v451_v22, %v613_v61  ;;  %v321_v29 = vmul.f32 %v300_v26, %v273_v21  ;;  %470 = vtanh.f32 %v195_v17 }
 0x12c   :  { %v455_v30 = vpop.eup %454  ;;  %v325_v31 = vsub.f32 %v594_v58, %v317_v23  ;;  %v270_v24 = vsub.f32 %v262_v25, %v453_v27 }
 0x12d   :  { %v457_v32 = vpop.eup %456  ;;  %v274_v33 = vsub.f32 %v266_v28, %v455_v30  ;;  %v329_v34 = vsub.f32 %v599_v59, %v321_v29 }
 0x12e   :  { %v459_v35 = vpop.eup %458  ;;  %v263_v36 = vmul.f32 %v457_v32, %v622_v62  ;;  %333 = vst [vmem:[#allocation5] sm:$0xff] %v325_v31  ;;  %v318_v37 = vmul.f32 %v285_v7, %v270_v24 }
 0x12f   :  { %v461_v39 = vpop.eup %460  ;;  %v322_v40 = vmul.f32 %v305_v38, %v274_v33  ;;  %337 = vst [vmem:[#allocation5 + $0x20] sm:$0xff] %v329_v34  ;;  %v267_v41 = vmul.f32 %v459_v35, %v627_v63 }
 0x130   :  { %v463_v42 = vpop.eup %462  ;;  %v271_v43 = vsub.f32 %v263_v36, %v461_v39  ;;  %v326_v58 = vsub.f32 %v608_v60, %v318_v37 }
 0x131   :  { %v465_v44 = vpop.eup %464  ;;  %v330_v45 = vsub.f32 %v613_v61, %v322_v40  ;;  %v275_v46 = vsub.f32 %v267_v41, %v463_v42 }
 0x132   :  { %v319_v59 = vmul.f32 %v290_v5, %v271_v43  ;;  %v264_v47 = vmul.f32 %v465_v44, %v636_v1  ;;  %334 = vst [vmem:[#allocation5 + $0x8] sm:$0xff] %v326_v58  ;;  %v467_v49 = vpop.eup %466 }
 0x133   :  { %338 = vst [vmem:[#allocation5 + $0x28] sm:$0xff] %v330_v45  ;;  %v323_v50 = vmul.f32 %v310_v48, %v275_v46 }
 0x134   :  { %v469_v51 = vpop.eup %468  ;;  %v327_v52 = vsub.f32 %v622_v62, %v319_v59  ;;  %v272_v53 = vsub.f32 %v264_v47, %v467_v49 }
 0x135   :  { %v268_v54 = vmul.f32 %v469_v51, %v641_v2  ;;  %v331_v60 = vsub.f32 %v627_v63, %v323_v50  ;;  %v471_v55 = vpop.eup %470 }
 0x136   :  { %335 = vst [vmem:[#allocation5 + $0x10] sm:$0xff] %v327_v52  ;;  %v320_v61 = vmul.f32 %v295_v19, %v272_v53 }
 0x137   :  { %v276_v56 = vsub.f32 %v268_v54, %v471_v55  ;;  %339 = vst [vmem:[#allocation5 + $0x30] sm:$0xff] %v331_v60 }
 0x138   :  { %v328_v57 = vsub.f32 %v636_v1, %v320_v61 }
 0x139   :  { %v324_v4 = vmul.f32 %v315_v3, %v276_v56 }
 0x13a   :  { %336 = vst [vmem:[#allocation5 + $0x18] sm:$0xff] %v328_v57 }
 0x13b   :  { %v332_v5 = vsub.f32 %v641_v2, %v324_v4 }
 0x13d   :  { %340 = vst [vmem:[#allocation5 + $0x38] sm:$0xff] %v332_v5 }
 0x13e   :  { %505 = shalt.err (!%p502_p12)
}
 0x13f   :  { %s506_s11 = scalar_lea.hbm %s690_s4, 1024 }
 0x140   :  { %p507_p13 = scmp.ne.s32.totalorder %s690_s4, %s506_s11  ;;  %p510_p0 = scmp.lt.u32.totalorder %s506_s11, %s690_s4 }
 0x142   :  { %p512_p1 = pnand %p510_p0, %p507_p13 }
 0x144   :  { %515 = shalt.err (!%p512_p1)
}
 0x145   :  { %s526_s16 = smov 128   ;;  %s527_s17 = smov 8  }
 0x146   :  { %352 = dma.vmem_to_hbm [thread:$0]  %s347_s2, 1024, %s690_s4, [#allocation4], %s526_s16, %s526_s16, %s527_s17  }
 0x147   :  { %518 = dma.done.wait [#allocation4], 1024  }
 0x148   :  { %519 = vsyncadd [#allocation4], 4294966272 }
 0x149   :  { %356 = vsyncpa [#allocation3], 1 }
 0x14a   :  { %357 = vsyncpa [#allocation4], 1 }

</bundles_post_ra>
